<compile_context>
chip_gen: v7x
topology: tpu7x:2x2x1
jax: 0.10.0
libtpu: 0.0.40
codegen_flags: <defaults>
</compile_context>

<pallas_src>
import jax
import jax.numpy as jnp
from jax.experimental import pallas as pl
from jax.experimental.pallas import tpu as pltpu


# ----------------------------------------------------------------------------
# Fused 1x1-conv + InfoNCE loss kernel (one lane tile of rows per grid step)
# ----------------------------------------------------------------------------
def _infonce_fused_kernel(wt_ref, ctx_ref, zpos_ref, zneg_ref, loss_ref):
    """Per-row InfoNCE loss for one tile of TN rows.

    wt_ref  : (C_in, C_out)    W_k^T, resident every tile
    ctx_ref : (C_out, TN)      context rows (channels on sublanes, rows on lanes)
    zpos_ref: (C_in, TN)       positive z rows
    zneg_ref: (NEG, C_in, TN)  gathered negative z rows
    loss_ref: (1, TN)          per-row -log p_true (lane-dense partial output)
    """
    # ctx . (W z) == (W^T ctx) . z  -> apply the fused 1x1 conv ONCE per tile,
    # to the context, instead of (1 + NEG) times to z.
    ctxw = jnp.dot(wt_ref[...], ctx_ref[...],
                   preferred_element_type=jnp.float32)             # (C_in, TN)

    # Scores: cheap sublane (channel) reductions; lane axis stays fully dense.
    s_pos = jnp.sum(ctxw * zpos_ref[...], axis=0, keepdims=True)   # (1, TN)
    n_neg = zneg_ref.shape[0]
    s_negs = [jnp.sum(ctxw * zneg_ref[k], axis=0, keepdims=True)
              for k in range(n_neg)]                               # NEG x (1, TN)

    # Numerically-stable softmax over the (1 + NEG) classes; only class 0 needed
    # because the NLL target is identically zero.
    m = s_pos
    for s in s_negs:
        m = jnp.maximum(m, s)
    e_pos = jnp.exp(s_pos - m)
    denom = e_pos
    for s in s_negs:
        denom = denom + jnp.exp(s - m)
    p_true = e_pos / denom

    # ExpNLLLoss(target=0): per-row -log(p + 1e-11); the mean happens outside.
    loss_ref[...] = -jnp.log(p_true + 1e-11)


def _pad_cols(x, n_pad):
    pad = n_pad - x.shape[-1]
    if pad == 0:
        return x
    widths = [(0, 0)] * (x.ndim - 1) + [(0, pad)]
    return jnp.pad(x, widths)          # zero padding -> finite loss, sliced off


def infonce_loss_fused(w_t, ctx, zpos, zneg, n_true, tile_n):
    """ctx: (C_out, N_pad), zpos: (C_in, N_pad), zneg: (NEG, C_in, N_pad)."""
    c_in, c_out = w_t.shape
    n_neg = zneg.shape[0]
    n_pad = ctx.shape[-1]
    num_tiles = n_pad // tile_n
    # Per-tile VMEM footprint (double buffered) ~ 2*(2*C + NEG*C + 1)*TN*4 B
    # (~150 KiB at C=8, NEG=4, TN=512) -- far under the scoped limit on
    # v5e/v6e (128 MiB) and v7x (64 MiB), so no vmem_limit override needed.
    losses = pl.pallas_call(
        _infonce_fused_kernel,
        grid=(num_tiles,),
        in_specs=[
            pl.BlockSpec((c_in, c_out), lambda i: (0, 0)),
            pl.BlockSpec((c_out, tile_n), lambda i: (0, i)),
            pl.BlockSpec((c_in, tile_n), lambda i: (0, i)),
            pl.BlockSpec((n_neg, c_in, tile_n), lambda i: (0, 0, i)),
        ],
        out_specs=pl.BlockSpec((1, tile_n), lambda i: (0, i)),
        out_shape=jax.ShapeDtypeStruct((1, n_pad), jnp.float32),
        compiler_params=pltpu.CompilerParams(
            dimension_semantics=("parallel",)),
    )(w_t, ctx, zpos, zneg)
    # Drop the zero-padded tail columns, then mean over the TRUE row count.
    return jnp.sum(losses[0, :n_true]) / n_true


# ----------------------------------------------------------------------------
# Forward pass
# ----------------------------------------------------------------------------
def infonce_forward_pallas(z, c, weights, neg_indices, negative_samples,
                           skip_step=1):
    b, c_in, h, w_dim = z.shape
    c_out = c.shape[1]
    k_pred = len(weights)

    # Hoist the NCHW -> channel-leading permute out of the k loop (one HBM pass
    # instead of k_pred), and pre-transpose the weights once.
    z_cl = jnp.transpose(z, (1, 2, 3, 0))            # (C_in, H, W, B)
    c_cl = jnp.transpose(c, (1, 2, 3, 0))            # (C_out, H, W, B)
    weights_t = [w.T for w in weights]               # (C_in, C_out) each

    total = jnp.float32(0.0)
    for k in range(1, k_pred + 1):
        cut = k + skip_step
        hp = h - cut
        n = hp * w_dim * b
        # Columns ordered (h', w, b) row-major == reference permute(2,3,0,1).view(-1, C).
        zpos = z_cl[:, cut:, :, :].reshape(c_in, n)   # (C_in, N)
        ctx = c_cl[:, :hp, :, :].reshape(c_out, n)    # (C_out, N)

        # TODO(synk): the random negative-row gather stays in XLA -- at C_in=8
        # each gathered row is only 32 bytes, too small for an efficient
        # in-kernel per-row DMA gather; gathering z (not W@z) still removes the
        # HBM round-trip of ztwk entirely.
        idx_kn = neg_indices[k - 1].reshape(n, negative_samples).T   # (NEG, N)
        zneg = jnp.transpose(zpos[:, idx_kn], (1, 0, 2))             # (NEG, C_in, N)

        tile_n = min(512, ((n + 127) // 128) * 128)
        n_pad = ((n + tile_n - 1) // tile_n) * tile_n
        total = total + infonce_loss_fused(
            weights_t[k - 1],
            _pad_cols(ctx, n_pad),
            _pad_cols(zpos, n_pad),
            _pad_cols(zneg, n_pad),
            n, tile_n)
    return total / k_pred


# ----------------------------------------------------------------------------
# Pure-JAX reference (mirror of the PyTorch forward) for correctness checking
# ----------------------------------------------------------------------------
def infonce_forward_reference(z, c, weights, neg_indices, negative_samples,
                              skip_step=1):
    k_pred = len(weights)
    total = 0.0
    for k in range(1, k_pred + 1):
        cut = k + skip_step
        wk = weights[k - 1]
        zs = z[:, :, cut:, :]
        ztwk = jnp.einsum('oc,bchw->bohw', wk, zs)
        ztwk = jnp.transpose(ztwk, (2, 3, 0, 1))                     # (H',W,B,Co)
        hp, wd, bb, co = ztwk.shape
        flat = ztwk.reshape(hp * wd * bb, co)
        shuf = flat[neg_indices[k - 1]].reshape(hp, wd, bb, negative_samples, co)
        shuf = jnp.transpose(shuf, (0, 1, 2, 4, 3))                  # (H',W,B,Co,NEG)
        context = jnp.transpose(c[:, :, :hp, :], (2, 3, 0, 1))[..., None, :]
        main = jnp.matmul(context, ztwk[..., None])[..., 0, :]       # (H',W,B,1)
        negs = jnp.matmul(context, shuf)[..., 0, :]                  # (H',W,B,NEG)
        logits = jnp.concatenate([main, negs], axis=3)
        logits = jnp.transpose(logits, (2, 3, 0, 1))                 # (B,1+NEG,H',W)
        p = jax.nn.softmax(logits, axis=1)
        total = total + jnp.mean(-jnp.log(p[:, 0] + 1e-11))
    return total / k_pred


# ----------------------------------------------------------------------------
# Deterministic parameter init (makeDeltaOrthogonal for 1x1 convs)
# ----------------------------------------------------------------------------
def gen_orthogonal(key, dim):
    a = jax.random.normal(key, (dim, dim), dtype=jnp.float32)
    q, r = jnp.linalg.qr(a)
    d = jnp.sign(jnp.diag(r))
    return q * d[None, :]


def make_delta_orthogonal_1x1(key, out_ch, in_ch, gain=1.0):
    # For a 1x1 conv the delta-orthogonal init is just the orthogonal slab at
    # the single spatial tap; sigmoid gain == 1.0.
    q = gen_orthogonal(key, max(out_ch, in_ch))
    return gain * q[:out_ch, :in_ch]                                 # (C_out, C_in)


# ----------------------------------------------------------------------------
if __name__ == "__main__":
    key = jax.random.PRNGKey(0)
    batch, in_channels, out_channels = 2, 8, 8
    height, width = 8, 8
    k_predictions, negative_samples, skip_step = 2, 4, 1

    key, kz, kc = jax.random.split(key, 3)
    z = jax.random.normal(kz, (batch, in_channels, height, width), jnp.float32)
    c = jax.random.normal(kc, (batch, out_channels, height, width), jnp.float32)

    weights = []
    for _ in range(k_predictions):
        key, kw = jax.random.split(key)
        weights.append(make_delta_orthogonal_1x1(kw, out_channels, in_channels))

    # Random negative-sample indices (uniform over the N flattened rows per k),
    # matching torch.randint semantics, deterministic via PRNGKey(0) splits.
    neg_indices = []
    for k in range(1, k_predictions + 1):
        hp = height - (k + skip_step)
        n = hp * width * batch
        key, ki = jax.random.split(key)
        neg_indices.append(jax.random.randint(ki, (n * negative_samples,), 0, n))

    loss = infonce_forward_pallas(z, c, weights, neg_indices,
                                  negative_samples, skip_step)
    loss = jax.block_until_ready(loss)

    ref = infonce_forward_reference(z, c, weights, neg_indices,
                                    negative_samples, skip_step)
    assert bool(jnp.isfinite(loss)), "non-finite loss"
    assert jnp.allclose(loss, ref, rtol=1e-4, atol=1e-5), (loss, ref)
    print("KERNEL_OK")
</pallas_src>

<mosaic_0001>
module attributes {stable_mosaic.version = 11 : i64} {
  func.func @_infonce_fused_kernel(%arg0: i32, %arg1: memref<8x8xf32, #tpu.memory_space<vmem>>, %arg2: memref<8x128xf32, #tpu.memory_space<vmem>>, %arg3: memref<8x128xf32, #tpu.memory_space<vmem>>, %arg4: memref<4x8x128xf32, #tpu.memory_space<vmem>>, %arg5: memref<1x128xf32, #tpu.memory_space<vmem>>) attributes {dimension_semantics = [#tpu.dimension_semantics<parallel>], iteration_bounds = array<i64: 1>, scalar_prefetch = 0 : i64, scratch_operands = 0 : i64, tpu.core_type = #tpu.core_type<tc>, window_params = [{pipeline_mode = #tpu.pipeline_mode<synchronous>, transform_indices = @transform_0, window_bounds = array<i64: 8, 8>}, {transform_indices = @transform_1, window_bounds = array<i64: 8, 128>}, {transform_indices = @transform_2, window_bounds = array<i64: 8, 128>}, {transform_indices = @transform_3, window_bounds = array<i64: 4, 8, 128>}, {transform_indices = @transform_4, window_bounds = array<i64: 1, 128>}]} {
    %c0 = arith.constant 0 : index
    %c0_0 = arith.constant 0 : index
    %0 = vector.load %arg1[%c0, %c0_0] : memref<8x8xf32, #tpu.memory_space<vmem>>, vector<8x8xf32>
    %c0_1 = arith.constant 0 : index
    %c0_2 = arith.constant 0 : index
    %1 = vector.load %arg2[%c0_1, %c0_2] : memref<8x128xf32, #tpu.memory_space<vmem>>, vector<8x128xf32>
    %cst = arith.constant dense<0.000000e+00> : vector<8x128xf32>
    %2 = tpu.matmul %0, %1, %cst {dimension_numbers = #tpu.dot_dimension_numbers<[1], [0], [0], [1], [0, 0, 1, 1], [], []>} : vector<8x8xf32>, vector<8x128xf32>, vector<8x128xf32> -> vector<8x128xf32>
    %c0_3 = arith.constant 0 : index
    %c0_4 = arith.constant 0 : index
    %3 = vector.load %arg3[%c0_3, %c0_4] : memref<8x128xf32, #tpu.memory_space<vmem>>, vector<8x128xf32>
    %4 = arith.mulf %2, %3 : vector<8x128xf32>
    %cst_5 = arith.constant dense<0.000000e+00> : vector<128xf32>
    %5 = vector.multi_reduction <add>, %4, %cst_5 [0] : vector<8x128xf32> to vector<128xf32>
    %6 = vector.shape_cast %5 : vector<128xf32> to vector<1x128xf32>
    %c0_6 = arith.constant 0 : index
    %c0_7 = arith.constant 0 : index
    %c0_8 = arith.constant 0 : index
    %7 = vector.load %arg4[%c0_6, %c0_7, %c0_8] : memref<4x8x128xf32, #tpu.memory_space<vmem>>, vector<1x8x128xf32>
    %8 = vector.shape_cast %7 : vector<1x8x128xf32> to vector<8x128xf32>
    %9 = arith.mulf %2, %8 : vector<8x128xf32>
    %cst_9 = arith.constant dense<0.000000e+00> : vector<128xf32>
    %10 = vector.multi_reduction <add>, %9, %cst_9 [0] : vector<8x128xf32> to vector<128xf32>
    %11 = vector.shape_cast %10 : vector<128xf32> to vector<1x128xf32>
    %c1 = arith.constant 1 : index
    %c0_10 = arith.constant 0 : index
    %c0_11 = arith.constant 0 : index
    %12 = vector.load %arg4[%c1, %c0_10, %c0_11] : memref<4x8x128xf32, #tpu.memory_space<vmem>>, vector<1x8x128xf32>
    %13 = vector.shape_cast %12 : vector<1x8x128xf32> to vector<8x128xf32>
    %14 = arith.mulf %2, %13 : vector<8x128xf32>
    %cst_12 = arith.constant dense<0.000000e+00> : vector<128xf32>
    %15 = vector.multi_reduction <add>, %14, %cst_12 [0] : vector<8x128xf32> to vector<128xf32>
    %16 = vector.shape_cast %15 : vector<128xf32> to vector<1x128xf32>
    %c2 = arith.constant 2 : index
    %c0_13 = arith.constant 0 : index
    %c0_14 = arith.constant 0 : index
    %17 = vector.load %arg4[%c2, %c0_13, %c0_14] : memref<4x8x128xf32, #tpu.memory_space<vmem>>, vector<1x8x128xf32>
    %18 = vector.shape_cast %17 : vector<1x8x128xf32> to vector<8x128xf32>
    %19 = arith.mulf %2, %18 : vector<8x128xf32>
    %cst_15 = arith.constant dense<0.000000e+00> : vector<128xf32>
    %20 = vector.multi_reduction <add>, %19, %cst_15 [0] : vector<8x128xf32> to vector<128xf32>
    %21 = vector.shape_cast %20 : vector<128xf32> to vector<1x128xf32>
    %c3 = arith.constant 3 : index
    %c0_16 = arith.constant 0 : index
    %c0_17 = arith.constant 0 : index
    %22 = vector.load %arg4[%c3, %c0_16, %c0_17] : memref<4x8x128xf32, #tpu.memory_space<vmem>>, vector<1x8x128xf32>
    %23 = vector.shape_cast %22 : vector<1x8x128xf32> to vector<8x128xf32>
    %24 = arith.mulf %2, %23 : vector<8x128xf32>
    %cst_18 = arith.constant dense<0.000000e+00> : vector<128xf32>
    %25 = vector.multi_reduction <add>, %24, %cst_18 [0] : vector<8x128xf32> to vector<128xf32>
    %26 = vector.shape_cast %25 : vector<128xf32> to vector<1x128xf32>
    %27 = arith.maximumf %6, %11 : vector<1x128xf32>
    %28 = arith.maximumf %27, %16 : vector<1x128xf32>
    %29 = arith.maximumf %28, %21 : vector<1x128xf32>
    %30 = arith.maximumf %29, %26 : vector<1x128xf32>
    %31 = arith.subf %6, %30 : vector<1x128xf32>
    %32 = math.exp %31 : vector<1x128xf32>
    %33 = arith.subf %11, %30 : vector<1x128xf32>
    %34 = math.exp %33 : vector<1x128xf32>
    %35 = arith.addf %32, %34 : vector<1x128xf32>
    %36 = arith.subf %16, %30 : vector<1x128xf32>
    %37 = math.exp %36 : vector<1x128xf32>
    %38 = arith.addf %35, %37 : vector<1x128xf32>
    %39 = arith.subf %21, %30 : vector<1x128xf32>
    %40 = math.exp %39 : vector<1x128xf32>
    %41 = arith.addf %38, %40 : vector<1x128xf32>
    %42 = arith.subf %26, %30 : vector<1x128xf32>
    %43 = math.exp %42 : vector<1x128xf32>
    %44 = arith.addf %41, %43 : vector<1x128xf32>
    %45 = arith.divf %32, %44 : vector<1x128xf32>
    %cst_19 = arith.constant 9.99999996E-12 : f32
    %46 = vector.broadcast %cst_19 : f32 to vector<1x128xf32>
    %47 = arith.addf %45, %46 : vector<1x128xf32>
    %48 = math.log %47 : vector<1x128xf32>
    %cst_20 = arith.constant 0.000000e+00 : f32
    %49 = vector.broadcast %cst_20 : f32 to vector<1x128xf32>
    %50 = arith.subf %49, %48 : vector<1x128xf32>
    %c0_21 = arith.constant 0 : index
    %c0_22 = arith.constant 0 : index
    %51 = vector.load %arg5[%c0_21, %c0_22] : memref<1x128xf32, #tpu.memory_space<vmem>>, vector<1x128xf32>
    tpu.vector_store %arg5[%c0_21, %c0_22], %50 {strides = array<i32>} : memref<1x128xf32, #tpu.memory_space<vmem>>, vector<1x128xf32>,
    return
  }
  func.func @transform_0(%arg0: i32) -> (i32, i32) {
    %c0_i32 = arith.constant 0 : i32
    %c0_i32_0 = arith.constant 0 : i32
    %c0_i32_1 = arith.constant 0 : i32
    return %c0_i32, %c0_i32_0 : i32, i32
  }
  func.func @transform_1(%arg0: i32) -> (i32, i32) {
    %c0_i32 = arith.constant 0 : i32
    %c0_i32_0 = arith.constant 0 : i32
    return %c0_i32, %arg0 : i32, i32
  }
  func.func @transform_2(%arg0: i32) -> (i32, i32) {
    %c0_i32 = arith.constant 0 : i32
    %c0_i32_0 = arith.constant 0 : i32
    return %c0_i32, %arg0 : i32, i32
  }
  func.func @transform_3(%arg0: i32) -> (i32, i32, i32) {
    %c0_i32 = arith.constant 0 : i32
    %c0_i32_0 = arith.constant 0 : i32
    %c0_i32_1 = arith.constant 0 : i32
    return %c0_i32, %c0_i32_0, %arg0 : i32, i32, i32
  }
  func.func @transform_4(%arg0: i32) -> (i32, i32) {
    %c0_i32 = arith.constant 0 : i32
    %c0_i32_0 = arith.constant 0 : i32
    return %c0_i32, %arg0 : i32, i32
  }
}

</mosaic_0001>

<bundles_post_ra>
// kernel: tpu_custom_call.1
= control target key start
LH: loop header
LB: loop body
LE: loop exit
PB: predicated region body
PF: predicated region fallthrough
CT: control target
= control target key end

     0   :  { %9 = vsyncpa [#allocation3], 0  ;;  %s483_s0 = inlined_call_operand.hbm [shape: f32[8,8], index: 0, kind: input, shape index: {}]   ;;  %s484_s1 = inlined_call_operand.hbm [shape: f32[8,128], index: 1, kind: input, shape index: {}]   ;;  %s485_s2 = inlined_call_operand.hbm [shape: f32[8,128], index: 2, kind: input, shape index: {}]   ;;  %s486_s3 = inlined_call_operand.hbm [shape: f32[4,8,128], index: 3, kind: input, shape index: {}]   ;;  %s487_s4 = inlined_call_operand.hbm [shape: f32[1,128], index: 4, kind: output, shape index: {}]  }
   0x1   :  { %10 = vsyncpa [#allocation6], 0 }
   0x2   :  { %11 = vsyncpa [#allocation9], 0 }
   0x3   :  { %12 = vsyncpa [#allocation4], 0  ;;  %s382_s15 = smov [#allocation5]   ;;  %s383_s17 = smov [#allocation2]  }
   0x4   :  { %s29_s16 = sshll.u32 %s382_s15, 4  ;;  %s19_s18 = sshll.u32 %s383_s17, 4  ;;  %s30_s16 = int_to_ptr.vmem [resolvable:$true] %s29_s16  ;;  %s20_s18 = int_to_ptr.vmem [resolvable:$true] %s19_s18 }
   0x5   :  { %s264_s21 = scalar_lea.hbm %s484_s1, 128 }
   0x6   :  { %p265_p0 = scmp.ne.s32.totalorder %s484_s1, %s264_s21  ;;  %p268_p1 = scmp.lt.u32.totalorder %s264_s21, %s484_s1 }
   0x8   :  { %p270_p2 = pnand %p268_p1, %p265_p0 }
   0xa   :  { %273 = shalt.err (!%p270_p2)
}
   0xb   :  { %s274_s26 = scalar_lea.vmem %s30_s16, 128  ;;  %p279_p4 = scmp.lt.s32.totalorder %s30_s16, %s30_s16 }
   0xc   :  { %p275_p3 = scmp.ne.s32.totalorder %s30_s16, %s274_s26  ;;  %p280_p5 = scmp.lt.s32.totalorder %s274_s26, %s274_s26 }
   0xe   :  { %p281_p6 = por %p280_p5, %p279_p4 }
  0x10   :  { %p282_p7 = pnand %p281_p6, %p275_p3 }
  0x12   :  { %285 = shalt.err (!%p282_p7)
}
  0x13   :  { %32 = dma.hbm_to_vmem [thread:$0]  %s484_s1, 128, %s30_s16, [#allocation6]  }
  0x14   :  { %s286_s5 = scalar_lea.hbm %s483_s0, 128 }
  0x15   :  { %p287_p8 = scmp.ne.s32.totalorder %s483_s0, %s286_s5  ;;  %p290_p9 = scmp.lt.u32.totalorder %s286_s5, %s483_s0 }
  0x17   :  { %p292_p10 = pnand %p290_p9, %p287_p8 }
  0x19   :  { %295 = shalt.err (!%p292_p10)
}
  0x1a   :  { %s296_s10 = scalar_lea.vmem %s20_s18, 128  ;;  %p301_p12 = scmp.lt.s32.totalorder %s20_s18, %s20_s18 }
  0x1b   :  { %p297_p11 = scmp.ne.s32.totalorder %s20_s18, %s296_s10  ;;  %p302_p13 = scmp.lt.s32.totalorder %s296_s10, %s296_s10 }
  0x1d   :  { %p303_p0 = por %p302_p13, %p301_p12 }
  0x1f   :  { %p304_p1 = pnand %p303_p0, %p297_p11 }
  0x21   :  { %307 = shalt.err (!%p304_p1)
}
  0x22   :  { %22 = dma.hbm_to_vmem [thread:$0]  %s483_s0, 128, %s20_s18, [#allocation3]  }
  0x23   :  { %s384_s12 = smov [#allocation7]   ;;  %s385_s14 = smov [#allocation8]  }
  0x24   :  { %s39_s13 = sshll.u32 %s384_s12, 4  ;;  %s48_s15 = sshll.u32 %s385_s14, 4  ;;  %s40_s13 = int_to_ptr.vmem [resolvable:$true] %s39_s13  ;;  %s440_s15 = int_to_ptr.vmem [resolvable:$true] %s48_s15 }
  0x25   :  { %s308_s19 = scalar_lea.hbm %s485_s2, 128 }
  0x26   :  { %p309_p2 = scmp.ne.s32.totalorder %s485_s2, %s308_s19  ;;  %p312_p3 = scmp.lt.u32.totalorder %s308_s19, %s485_s2 }
  0x28   :  { %p314_p4 = pnand %p312_p3, %p309_p2 }
  0x2a   :  { %317 = shalt.err (!%p314_p4)
}
  0x2b   :  { %s318_s0 = scalar_lea.vmem %s40_s13, 128  ;;  %p323_p6 = scmp.lt.s32.totalorder %s40_s13, %s40_s13 }
  0x2c   :  { %p319_p5 = scmp.ne.s32.totalorder %s40_s13, %s318_s0  ;;  %p324_p7 = scmp.lt.s32.totalorder %s318_s0, %s318_s0 }
  0x2e   :  { %p325_p8 = por %p324_p7, %p323_p6 }
  0x30   :  { %p326_p9 = pnand %p325_p8, %p319_p5 }
  0x32   :  { %329 = shalt.err (!%p326_p9)
}
  0x33   :  { %42 = dma.hbm_to_vmem [thread:$0]  %s485_s2, 128, %s40_s13, [#allocation6]  }
  0x34   :  { %s330_s27 = scalar_lea.hbm %s486_s3, 512 }
  0x35   :  { %p331_p10 = scmp.ne.s32.totalorder %s486_s3, %s330_s27  ;;  %p334_p11 = scmp.lt.u32.totalorder %s330_s27, %s486_s3 }
  0x37   :  { %p336_p12 = pnand %p334_p11, %p331_p10 }
  0x39   :  { %339 = shalt.err (!%p336_p12)
}
  0x3a   :  { %s340_s6 = scalar_lea.vmem %s440_s15, 512  ;;  %p345_p0 = scmp.lt.s32.totalorder %s440_s15, %s440_s15 }
  0x3b   :  { %p341_p13 = scmp.ne.s32.totalorder %s440_s15, %s340_s6  ;;  %p346_p1 = scmp.lt.s32.totalorder %s340_s6, %s340_s6 }
  0x3d   :  { %p347_p2 = por %p346_p1, %p345_p0 }
  0x3f   :  { %p348_p3 = pnand %p347_p2, %p341_p13 }
  0x41   :  { %351 = shalt.err (!%p348_p3)
}
  0x42   :  { %s386_s2 = smov 128   ;;  %s387_s7 = smov 8  }
  0x43   :  { %54 = dma.hbm_to_vmem [thread:$0]  %s486_s3, 512, %s440_s15, [#allocation9], %s386_s2, %s386_s2, %s387_s7  }
  0x44   :  { %374 = dma.done.wait [#allocation3], 128  }
  0x45   :  { %375 = vsyncadd [#allocation3], 4294967168 }
  0x46   :  { %376 = dma.done.wait [#allocation6], 256  }
  0x47   :  { %377 = vsyncadd [#allocation6], 4294967040 }
  0x48   :  { %378 = dma.done.wait [#allocation9], 512  }
  0x49   :  { %379 = vsyncadd [#allocation9], 4294966784  ;;  %v388_v0 = vmov 0.0   ;;  %vm389_vm0 = vmmov 0   ;;  %vm69_vm1 = vcmask 64512   ;;  %v68_v1 = vld [vmem:[#allocation5] sm:$0xff] }
  0x4a   :  { %236 = vmatprep.subr.mxu0 %v388_v0  ;;  %238 = vmatprep.mubr.msk.f32.mxu0 %vm389_vm0, %v388_v0  ;;  %v67_v2 = vld [vmem:[#allocation2] sm:$0xff]  ;;  %v143_v3 = vld [vmem:[#allocation7] sm:$0xff]  ;;  %v151_v4 = vld [vmem:[#allocation8] sm:$0xff]  ;;  %s390_s3 = smov [#allocation10]  }
  0x4b   :  { %237 = vmatpush3.msra.mxu0 %v68_v1  ;;  %v160_v5 = vld [vmem:[#allocation8 + $0x8] sm:$0xff]  ;;  %v169_v6 = vld [vmem:[#allocation8 + $0x10] sm:$0xff]  ;;  %v178_v7 = vld [vmem:[#allocation8 + $0x18] sm:$0xff]  ;;  %s222_s10 = sshll.u32 %s390_s3, 4  ;;  %s223_s10 = int_to_ptr.vmem [resolvable:$true] %s222_s10 }
  0x4c   :  { %239 = vmatmul.mubr.msk.f32.vlgmr.msra.gmra.mrb[0].mxu0 %vm69_vm1, %v67_v2  ;;  %s352_s1 = scalar_lea.vmem %s223_s10, 16  ;;  %s356_s11 = scalar_lea.vmem %s223_s10, 32 }
  0x4d   :  { %p353_p4 = scmp.ne.s32.totalorder %s223_s10, %s352_s1  ;;  %p357_p5 = scmp.lt.s32.totalorder %s223_s10, %s223_s10 }
  0x4e   :  { %p358_p6 = scmp.lt.s32.totalorder %s356_s11, %s352_s1 }
  0x50   :  { %p359_p7 = por %p358_p6, %p357_p5 }
  0x52   :  { %p360_p8 = pnand %p359_p7, %p353_p4 }
 0x11f   :  { %v139_v8 = vpop.f32.mrb[0].mxu0 }
 0x120   :  { %v144_v9 = vmul.f32 %v143_v3, %v139_v8  ;;  %v152_v10 = vmul.f32 %v151_v4, %v139_v8  ;;  %v161_v11 = vmul.f32 %v160_v5, %v139_v8  ;;  %v170_v12 = vmul.f32 %v169_v6, %v139_v8  ;;  %v240_v13 = vpop.f32.mrb[1].mxu0 }
 0x121   :  { %v179_v14 = vmul.f32 %v178_v7, %v139_v8 }
 0x122   :  { %v145_v15 = vrot.slane %v144_v9, 4  ;;  %v153_v16 = vrot.slane %v152_v10, 4  ;;  %v162_v17 = vrot.slane %v161_v11, 4  ;;  %v171_v18 = vrot.slane %v170_v12, 4 }
 0x123   :  { %v180_v19 = vrot.slane %v179_v14, 4 }
 0x124   :  { %v146_v20 = vadd.f32 %v145_v15, %v144_v9  ;;  %v154_v21 = vadd.f32 %v153_v16, %v152_v10  ;;  %v163_v22 = vadd.f32 %v162_v17, %v161_v11  ;;  %v172_v23 = vadd.f32 %v171_v18, %v170_v12 }
 0x125   :  { %v181_v24 = vadd.f32 %v180_v19, %v179_v14 }
 0x126   :  { %v147_v25 = vrot.slane %v146_v20, 2  ;;  %v155_v26 = vrot.slane %v154_v21, 2  ;;  %v164_v27 = vrot.slane %v163_v22, 2  ;;  %v173_v28 = vrot.slane %v172_v23, 2 }
 0x127   :  { %v182_v29 = vrot.slane %v181_v24, 2 }
 0x128   :  { %v148_v30 = vadd.f32 %v147_v25, %v146_v20  ;;  %v156_v31 = vadd.f32 %v155_v26, %v154_v21  ;;  %v165_v32 = vadd.f32 %v164_v27, %v163_v22  ;;  %v174_v33 = vadd.f32 %v173_v28, %v172_v23 }
 0x129   :  { %v183_v37 = vadd.f32 %v182_v29, %v181_v24 }
 0x12a   :  { %v149_v34 = vrot.slane %v148_v30, 1  ;;  %v157_v35 = vrot.slane %v156_v31, 1  ;;  %v166_v36 = vrot.slane %v165_v32, 1  ;;  %v175_v40 = vrot.slane %v174_v33, 1 }
 0x12b   :  { %v184_v42 = vrot.slane %v183_v37, 1 }
 0x12c   :  { %v150_v38 = vadd.f32 %v149_v34, %v148_v30  ;;  %v158_v39 = vadd.f32 %v157_v35, %v156_v31  ;;  %v167_v41 = vadd.f32 %v166_v36, %v165_v32  ;;  %v176_v44 = vadd.f32 %v175_v40, %v174_v33 }
 0x12d   :  { %v185_v46 = vadd.f32 %v184_v42, %v183_v37 }
 0x12e   :  { %v186_v43 = vmax.f32 %v150_v38, %v158_v39 }
 0x130   :  { %v187_v45 = vmax.f32 %v186_v43, %v167_v41 }
 0x132   :  { %v188_v47 = vmax.f32 %v187_v45, %v176_v44 }
 0x134   :  { %v189_v48 = vmax.f32 %v188_v47, %v185_v46 }
 0x136   :  { %v190_v49 = vsub.f32 %v150_v38, %v189_v48  ;;  %v193_v50 = vsub.f32 %v158_v39, %v189_v48  ;;  %v197_v51 = vsub.f32 %v167_v41, %v189_v48  ;;  %v201_v52 = vsub.f32 %v176_v44, %v189_v48 }
 0x137   :  { %v205_v56 = vsub.f32 %v185_v46, %v189_v48 }
 0x138   :  { %v191_v53 = vmul.f32 1.442695, %v190_v49  ;;  %v194_v54 = vmul.f32 1.442695, %v193_v50  ;;  %v198_v55 = vmul.f32 1.442695, %v197_v51 }
 0x139   :  { %v202_v57 = vmul.f32 1.442695, %v201_v52  ;;  %v206_v58 = vmul.f32 1.442695, %v205_v56 }
 0x13a   :  { %250 = vpow2.f32 %v191_v53 }
 0x13b   :  { %252 = vpow2.f32 %v194_v54 }
 0x13c   :  { %254 = vpow2.f32 %v198_v55 }
 0x13d   :  { %256 = vpow2.f32 %v202_v57 }
 0x13e   :  { %258 = vpow2.f32 %v206_v58 }
 0x144   :  { %v251_v59 = vpop.eup %250 }
 0x145   :  { %v253_v60 = vpop.eup %252 }
 0x146   :  { %v196_v61 = vadd.f32 %v253_v60, %v251_v59  ;;  %v255_v62 = vpop.eup %254 }
 0x147   :  { %v257_v0 = vpop.eup %256 }
 0x148   :  { %v200_v63 = vadd.f32 %v255_v62, %v196_v61  ;;  %v259_v2 = vpop.eup %258 }
 0x14a   :  { %v204_v1 = vadd.f32 %v257_v0, %v200_v63 }
 0x14c   :  { %v208_v3 = vadd.f32 %v259_v2, %v204_v1 }
 0x14e   :  { %260 = vrcp.f32 %v208_v3 }
 0x158   :  { %v261_v4 = vpop.eup %260 }
 0x159   :  { %v210_v5 = vmul.f32 %v261_v4, %v251_v59 }
 0x15b   :  { %v211_v6 = vadd.f32 1e-11, %v210_v5 }
 0x15d   :  { %262 = vlog2.f32 %v211_v6 }
 0x167   :  { %v263_v7 = vpop.eup %262 }
 0x168   :  { %v213_v8 = vmul.f32 0.6931472, %v263_v7 }
 0x16a   :  { %v214_v9 = vsub.f32 0.0, %v213_v8 }
 0x16c   :  { %215 = vst [vmem:[#allocation10] sm:$0x1] %v214_v9 }
 0x16d   :  { %363 = shalt.err (!%p360_p8)
}
 0x16e   :  { %s364_s14 = scalar_lea.hbm %s487_s4, 16 }
 0x16f   :  { %p365_p9 = scmp.ne.s32.totalorder %s487_s4, %s364_s14  ;;  %p368_p10 = scmp.lt.u32.totalorder %s364_s14, %s487_s4 }
 0x171   :  { %p370_p11 = pnand %p368_p10, %p365_p9 }
 0x173   :  { %373 = shalt.err (!%p370_p11)
}
 0x174   :  { %225 = dma.vmem_to_hbm [thread:$0]  %s223_s10, 16, %s487_s4, [#allocation4]  }
 0x175   :  { %380 = dma.done.wait [#allocation4], 16  }
 0x176   :  { %381 = vsyncadd [#allocation4], 4294967280 }
 0x177   :  { %229 = vsyncpa [#allocation3], 1 }
 0x178   :  { %230 = vsyncpa [#allocation6], 1 }
 0x179   :  { %231 = vsyncpa [#allocation9], 1 }
 0x17a   :  { %232 = vsyncpa [#allocation4], 1 }

</bundles_post_ra>
